<compile_context>
chip_gen: v6e
topology: v6e:2x2x1
jax: 0.10.0
libtpu: 0.0.40
codegen_flags: <defaults>
</compile_context>

<pallas_src>
import math
from functools import partial

import numpy as np
import jax
import jax.numpy as jnp
from jax.experimental import pallas as pl
from jax.experimental.pallas import tpu as pltpu

# ActivateFun: the module supports 'relu' and an erf-based 'gelu'.
ACTIVATE_FUN = "relu"
PATCH = 4          # surrogate-ViT patch size
TRAN_DIM = 32      # opt.tran_dim (small stand-in for 768)
H_TEXT = 32        # surrogate BERT hidden size (stand-in for 768)
VOCAB = 100


def _activate(x, kind):
    if kind == "relu":
        return jnp.maximum(x, 0.0)
    elif kind == "gelu":
        return x * 0.5 * (1.0 + jax.lax.erf(x / math.sqrt(2.0)))
    raise ValueError(kind)


# ---------------------------------------------------------------------------
# Fused kernel: text_change + concat + 'att' fusion, one batch tile per step.
#   text_init = act(text_hidden @ Wt + bt)
#   feats     = concat([text_init, image_init], seq)
#   scores    = act(feats @ W1 + b1) @ W2 + b2        (lane-dense (TB, L))
#   alpha     = softmax(masked_fill(scores, mask==0, -1e9), axis=L)
#   pooled    = alpha @ feats                          (MXU batched matmul)
# ---------------------------------------------------------------------------
def _fused_fuse_kernel(text_ref, img_ref, mask_ref,
                       tw_ref, tb_ref, w1_ref, b1_ref, w2_ref, b2_ref,
                       text_init_ref, pooled_ref, *, activate_fun):
    TB, Lt, H = text_ref.shape
    _, Li, D = img_ref.shape
    L = Lt + Li
    D2 = w1_ref.shape[1]

    # -- text_change: Linear(H -> D) + ActivateFun (bf16 MXU, f32 accumulate) --
    th2 = text_ref[...].reshape(TB * Lt, H).astype(jnp.bfloat16)
    text_init2 = _activate(
        jnp.dot(th2, tw_ref[...].astype(jnp.bfloat16),
                preferred_element_type=jnp.float32) + tb_ref[...],
        activate_fun)                                       # (TB*Lt, D) f32
    text_init3 = text_init2.reshape(TB, Lt, D)
    text_init_ref[...] = text_init3

    # -- concat text / image sequence features (sublane-aligned: Lt, Li % 8 == 0)
    feats3 = jnp.concatenate([text_init3, img_ref[...]], axis=1)   # (TB, L, D)

    # -- output_attention MLP: Linear(D -> D2) + act + Linear(D2 -> 1) --
    h2 = _activate(
        jnp.dot(feats3.reshape(TB * L, D).astype(jnp.bfloat16),
                w1_ref[...].astype(jnp.bfloat16),
                preferred_element_type=jnp.float32) + b1_ref[...],
        activate_fun)                                       # (TB*L, D2) f32
    # Linear(D2 -> 1) as elementwise mul + lane reduce; scores laid out with the
    # sequence on the lane axis -> lane-dense softmax.
    scores = jnp.sum(h2.reshape(TB, L, D2) * w2_ref[...], axis=-1) + b2_ref[...]
    # scores: (TB, L)

    mask = mask_ref[...][:, 0, :]                           # (TB, L), lane-dense
    scores = jnp.where(mask == 0.0, jnp.float32(-1e9), scores)   # masked_fill
    smax = jnp.max(scores, axis=-1, keepdims=True)
    e = jnp.exp(scores - smax)
    alpha = e / jnp.sum(e, axis=-1, keepdims=True)          # softmax over L

    # -- weighted sum over the sequence on the MXU: (TB,1,L) x (TB,L,D) --
    pooled = jnp.einsum("bql,bld->bqd",
                        alpha[:, None, :].astype(jnp.bfloat16),
                        feats3.astype(jnp.bfloat16),
                        preferred_element_type=jnp.float32)  # (TB, 1, D) f32
    pooled_ref[...] = pooled


def _pick_batch_tile(B):
    # Two "parallel" grid steps when the batch splits evenly (feeds both
    # TensorCores on v7x); otherwise a single full-batch step.
    if B >= 2 and B % 2 == 0:
        return B // 2
    return B


def fused_text_change_att_fuse(text_hidden, image_init, mask, params,
                               activate_fun=ACTIVATE_FUN):
    B, Lt, H = text_hidden.shape
    _, Li, D = image_init.shape
    L = Lt + Li
    D2 = params["att_w1"].shape[1]
    TB = _pick_batch_tile(B)

    text_init, pooled = pl.pallas_call(
        partial(_fused_fuse_kernel, activate_fun=activate_fun),
        out_shape=(
            jax.ShapeDtypeStruct((B, Lt, D), jnp.float32),   # text_init
            jax.ShapeDtypeStruct((B, 1, D), jnp.float32),    # pooled
        ),
        grid=(B // TB,),
        in_specs=[
            pl.BlockSpec((TB, Lt, H), lambda b: (b, 0, 0)),  # text_hidden tile
            pl.BlockSpec((TB, Li, D), lambda b: (b, 0, 0)),  # image_init tile
            pl.BlockSpec((TB, 1, L), lambda b: (b, 0, 0)),   # mask (L on lanes)
            pl.BlockSpec((H, D), lambda b: (0, 0)),          # Wt (shared)
            pl.BlockSpec((1, D), lambda b: (0, 0)),          # bt
            pl.BlockSpec((D, D2), lambda b: (0, 0)),         # W1
            pl.BlockSpec((1, D2), lambda b: (0, 0)),         # b1
            pl.BlockSpec((1, D2), lambda b: (0, 0)),         # W2 (as a row)
            pl.BlockSpec((1, 1), lambda b: (0, 0)),          # b2
        ],
        out_specs=(
            pl.BlockSpec((TB, Lt, D), lambda b: (b, 0, 0)),
            pl.BlockSpec((TB, 1, D), lambda b: (b, 0, 0)),
        ),
        compiler_params=pltpu.CompilerParams(
            dimension_semantics=("parallel",)),
    )(
        text_hidden.astype(jnp.float32),
        image_init.astype(jnp.float32),
        mask.reshape(B, 1, L).astype(jnp.float32),
        params["text_w"].astype(jnp.float32),
        params["text_b"].reshape(1, D).astype(jnp.float32),
        params["att_w1"].astype(jnp.float32),
        params["att_b1"].reshape(1, D2).astype(jnp.float32),
        params["att_w2"].reshape(1, D2).astype(jnp.float32),
        params["att_b2"].reshape(1, 1).astype(jnp.float32),
    )
    return text_init, pooled[:, 0, :]                        # (B, Lt, D), (B, D)


# ---------------------------------------------------------------------------
# FuseModel.forward (fuse_type == 'att') — glue + single fused Pallas call.
# ---------------------------------------------------------------------------
@jax.jit
def _fuse_core(params, text_ids, images, text_image_mask):
    # TODO(synk): frozen pretrained BERT last_hidden_state replaced by a
    # deterministic surrogate embedding lookup (plain-JAX glue).
    text_hidden = params["bert_embed"][text_ids]             # (B, Lt, H)
    B, Lt, H = text_hidden.shape

    # TODO(synk): frozen pretrained ViT last_hidden_state replaced by a
    # deterministic surrogate patch projection (plain-JAX glue).
    _, C, Hh, Ww = images.shape
    P = PATCH
    Li = (Hh // P) * (Ww // P)
    patches = images.reshape(B, C, Hh // P, P, Ww // P, P)
    patches = patches.transpose(0, 2, 4, 1, 3, 5).reshape(B, Li, C * P * P)
    image_init = patches @ params["vit_w"] + params["vit_b"]  # (B, Li, D)

    L = Lt + Li
    mask = text_image_mask[:, :L]                             # slice like torch ref

    text_init, pooled = fused_text_change_att_fuse(
        text_hidden, image_init, mask, params, ACTIVATE_FUN)
    return pooled, image_init, text_init


def fuse_forward(params, text_ids, bert_attention_mask, images, text_image_mask):
    del bert_attention_mask  # TODO(synk): only consumed by the frozen BERT surrogate
    pooled, image_init, text_init = _fuse_core(params, text_ids, images,
                                               text_image_mask)
    B = text_ids.shape[0]
    L = text_init.shape[1] + image_init.shape[1]
    cap_length = np.array([L] * B)
    return pooled, image_init, text_init, cap_length


# ---------------------------------------------------------------------------
# TensorBoardModel.forward — origin + augment batched into ONE kernel launch.
# ---------------------------------------------------------------------------
def tensorboard_forward(params,
                        texts, bert_attention_mask, images, text_image_mask,
                        texts_augment, bert_attention_mask_augment,
                        images_augment, text_image_mask_augment, label):
    # Origin / augment pipelines are independent per example -> stack along the
    # batch axis and run the fused kernel once (halves launches, gives the grid
    # >=2 parallel steps for v7x megacore).
    B = texts.shape[0]
    texts_all = jnp.concatenate([texts, texts_augment], axis=0)
    bam_all = jnp.concatenate([bert_attention_mask, bert_attention_mask_augment],
                              axis=0)
    images_all = jnp.concatenate([images, images_augment], axis=0)
    timask_all = jnp.concatenate([text_image_mask, text_image_mask_augment],
                                 axis=0)

    pooled, image_init, text_init, cap_length = fuse_forward(
        params, texts_all, bam_all, images_all, timask_all)

    orgin_out = (pooled[:B], image_init[:B], text_init[:B], cap_length[:B])
    augment_out = (pooled[B:], image_init[B:], text_init[B:], cap_length[B:])
    return orgin_out, augment_out, label


def init_params(key):
    ks = jax.random.split(key, 8)
    D, D2 = TRAN_DIM, TRAN_DIM // 2
    patch_dim = 3 * PATCH * PATCH
    s = 0.02
    return {
        "bert_embed": s * jax.random.normal(ks[0], (VOCAB, H_TEXT), jnp.float32),
        "text_w":     s * jax.random.normal(ks[1], (H_TEXT, D), jnp.float32),
        "text_b":     s * jax.random.normal(ks[2], (D,), jnp.float32),
        "vit_w":      s * jax.random.normal(ks[3], (patch_dim, D), jnp.float32),
        "vit_b":      s * jax.random.normal(ks[4], (D,), jnp.float32),
        "att_w1":     s * jax.random.normal(ks[5], (D, D2), jnp.float32),
        "att_b1":     s * jax.random.normal(ks[6], (D2,), jnp.float32),
        "att_w2":     s * jax.random.normal(ks[7], (D2, 1), jnp.float32),
        "att_b2":     jnp.zeros((1,), jnp.float32),
    }


if __name__ == "__main__":
    key = jax.random.PRNGKey(0)
    kp, kt, ki, kta, kia = jax.random.split(key, 5)

    B, Lt = 2, 8
    C, Hh, Ww = 3, 16, 16
    Li = (Hh // PATCH) * (Ww // PATCH)          # 16
    L_full = Lt + Li + 8                        # mask longer than L; sliced inside

    params = init_params(kp)

    texts = jax.random.randint(kt, (B, Lt), 0, VOCAB)
    bert_attention_mask = jnp.ones((B, Lt), jnp.int32)
    images = jax.random.normal(ki, (B, C, Hh, Ww), jnp.float32)
    text_image_mask = jnp.ones((B, L_full), jnp.int32)
    text_image_mask = text_image_mask.at[1, Lt + Li - 4:].set(0)  # exercise masking

    texts_augment = jax.random.randint(kta, (B, Lt), 0, VOCAB)
    bert_attention_mask_augment = jnp.ones((B, Lt), jnp.int32)
    images_augment = jax.random.normal(kia, (B, C, Hh, Ww), jnp.float32)
    text_image_mask_augment = jnp.ones((B, L_full), jnp.int32)

    label = jnp.array([0, 1], jnp.int32)

    out = tensorboard_forward(params,
                              texts, bert_attention_mask, images, text_image_mask,
                              texts_augment, bert_attention_mask_augment,
                              images_augment, text_image_mask_augment, label)

    (orig_pool, orig_img, orig_txt, orig_cap), (aug_pool, aug_img, aug_txt, aug_cap), lbl = out
    jax.block_until_ready((orig_pool, orig_img, orig_txt, aug_pool, aug_img, aug_txt, lbl))
    assert orig_pool.shape == (B, TRAN_DIM)
    assert orig_txt.shape == (B, Lt, TRAN_DIM)
    assert orig_img.shape == (B, Li, TRAN_DIM)
    assert aug_pool.shape == (B, TRAN_DIM)
    assert len(orig_cap) == B and len(aug_cap) == B
    print("KERNEL_OK")
</pallas_src>

<mosaic_0001>
module attributes {stable_mosaic.version = 11 : i64} {
  func.func @_fused_fuse_kernel(%arg0: i32, %arg1: memref<2x8x32xf32, #tpu.memory_space<vmem>>, %arg2: memref<2x16x32xf32, #tpu.memory_space<vmem>>, %arg3: memref<2x1x24xf32, #tpu.memory_space<vmem>>, %arg4: memref<32x32xf32, #tpu.memory_space<vmem>>, %arg5: memref<1x32xf32, #tpu.memory_space<vmem>>, %arg6: memref<32x16xf32, #tpu.memory_space<vmem>>, %arg7: memref<1x16xf32, #tpu.memory_space<vmem>>, %arg8: memref<1x16xf32, #tpu.memory_space<vmem>>, %arg9: memref<1x1xf32, #tpu.memory_space<vmem>>, %arg10: memref<2x8x32xf32, #tpu.memory_space<vmem>>, %arg11: memref<2x1x32xf32, #tpu.memory_space<vmem>>) attributes {dimension_semantics = [#tpu.dimension_semantics<parallel>], iteration_bounds = array<i64: 2>, scalar_prefetch = 0 : i64, scratch_operands = 0 : i64, tpu.core_type = #tpu.core_type<tc>, window_params = [{transform_indices = @transform_0, window_bounds = array<i64: 2, 8, 32>}, {transform_indices = @transform_1, window_bounds = array<i64: 2, 16, 32>}, {transform_indices = @transform_2, window_bounds = array<i64: 2, 1, 24>}, {pipeline_mode = #tpu.pipeline_mode<synchronous>, transform_indices = @transform_3, window_bounds = array<i64: 32, 32>}, {pipeline_mode = #tpu.pipeline_mode<synchronous>, transform_indices = @transform_4, window_bounds = array<i64: 1, 32>}, {pipeline_mode = #tpu.pipeline_mode<synchronous>, transform_indices = @transform_5, window_bounds = array<i64: 32, 16>}, {pipeline_mode = #tpu.pipeline_mode<synchronous>, transform_indices = @transform_6, window_bounds = array<i64: 1, 16>}, {pipeline_mode = #tpu.pipeline_mode<synchronous>, transform_indices = @transform_7, window_bounds = array<i64: 1, 16>}, {pipeline_mode = #tpu.pipeline_mode<synchronous>, transform_indices = @transform_8, window_bounds = array<i64: 1, 1>}, {transform_indices = @transform_9, window_bounds = array<i64: 2, 8, 32>}, {transform_indices = @transform_10, window_bounds = array<i64: 2, 1, 32>}]} {
    %c0 = arith.constant 0 : index
    %c0_0 = arith.constant 0 : index
    %c0_1 = arith.constant 0 : index
    %0 = vector.load %arg1[%c0, %c0_0, %c0_1] : memref<2x8x32xf32, #tpu.memory_space<vmem>>, vector<2x8x32xf32>
    %1 = vector.shape_cast %0 : vector<2x8x32xf32> to vector<16x32xf32>
    %2 = arith.truncf %1 : vector<16x32xf32> to vector<16x32xbf16>
    %c0_2 = arith.constant 0 : index
    %c0_3 = arith.constant 0 : index
    %3 = vector.load %arg4[%c0_2, %c0_3] : memref<32x32xf32, #tpu.memory_space<vmem>>, vector<32x32xf32>
    %4 = arith.truncf %3 : vector<32x32xf32> to vector<32x32xbf16>
    %cst = arith.constant dense<0.000000e+00> : vector<16x32xf32>
    %5 = tpu.matmul %2, %4, %cst {dimension_numbers = #tpu.dot_dimension_numbers<[1], [0], [0], [1], [0, 0, 1, 1], [], []>} : vector<16x32xbf16>, vector<32x32xbf16>, vector<16x32xf32> -> vector<16x32xf32>
    %c0_4 = arith.constant 0 : index
    %c0_5 = arith.constant 0 : index
    %6 = vector.load %arg5[%c0_4, %c0_5] : memref<1x32xf32, #tpu.memory_space<vmem>>, vector<1x32xf32>
    %7 = vector.broadcast %6 : vector<1x32xf32> to vector<16x32xf32>
    %8 = arith.addf %5, %7 : vector<16x32xf32>
    %cst_6 = arith.constant 0.000000e+00 : f32
    %9 = vector.broadcast %cst_6 : f32 to vector<16x32xf32>
    %10 = arith.maximumf %8, %9 : vector<16x32xf32>
    %11 = vector.shape_cast %10 : vector<16x32xf32> to vector<2x8x32xf32>
    %c0_7 = arith.constant 0 : index
    %c0_8 = arith.constant 0 : index
    %c0_9 = arith.constant 0 : index
    %12 = vector.load %arg10[%c0_7, %c0_8, %c0_9] : memref<2x8x32xf32, #tpu.memory_space<vmem>>, vector<2x8x32xf32>
    tpu.vector_store %arg10[%c0_7, %c0_8, %c0_9], %11 {strides = array<i32>} : memref<2x8x32xf32, #tpu.memory_space<vmem>>, vector<2x8x32xf32>,
    %c0_10 = arith.constant 0 : index
    %c0_11 = arith.constant 0 : index
    %c0_12 = arith.constant 0 : index
    %13 = vector.load %arg2[%c0_10, %c0_11, %c0_12] : memref<2x16x32xf32, #tpu.memory_space<vmem>>, vector<2x16x32xf32>
    %14 = tpu.concatenate %11, %13 in 1 : vector<2x8x32xf32>, vector<2x16x32xf32> -> vector<2x24x32xf32>
    %15 = vector.shape_cast %14 : vector<2x24x32xf32> to vector<48x32xf32>
    %16 = arith.truncf %15 : vector<48x32xf32> to vector<48x32xbf16>
    %c0_13 = arith.constant 0 : index
    %c0_14 = arith.constant 0 : index
    %17 = vector.load %arg6[%c0_13, %c0_14] : memref<32x16xf32, #tpu.memory_space<vmem>>, vector<32x16xf32>
    %18 = arith.truncf %17 : vector<32x16xf32> to vector<32x16xbf16>
    %cst_15 = arith.constant dense<0.000000e+00> : vector<48x16xf32>
    %19 = tpu.matmul %16, %18, %cst_15 {dimension_numbers = #tpu.dot_dimension_numbers<[1], [0], [0], [1], [0, 0, 1, 1], [], []>} : vector<48x32xbf16>, vector<32x16xbf16>, vector<48x16xf32> -> vector<48x16xf32>
    %c0_16 = arith.constant 0 : index
    %c0_17 = arith.constant 0 : index
    %20 = vector.load %arg7[%c0_16, %c0_17] : memref<1x16xf32, #tpu.memory_space<vmem>>, vector<1x16xf32>
    %21 = vector.broadcast %20 : vector<1x16xf32> to vector<48x16xf32>
    %22 = arith.addf %19, %21 : vector<48x16xf32>
    %cst_18 = arith.constant 0.000000e+00 : f32
    %23 = vector.broadcast %cst_18 : f32 to vector<48x16xf32>
    %24 = arith.maximumf %22, %23 : vector<48x16xf32>
    %25 = vector.shape_cast %24 : vector<48x16xf32> to vector<2x24x16xf32>
    %c0_19 = arith.constant 0 : index
    %c0_20 = arith.constant 0 : index
    %26 = vector.load %arg8[%c0_19, %c0_20] : memref<1x16xf32, #tpu.memory_space<vmem>>, vector<1x16xf32>
    %27 = vector.shape_cast %26 : vector<1x16xf32> to vector<1x1x16xf32>
    %28 = vector.broadcast %27 : vector<1x1x16xf32> to vector<2x24x16xf32>
    %29 = arith.mulf %25, %28 : vector<2x24x16xf32>
    %cst_21 = arith.constant dense<0.000000e+00> : vector<2x24xf32>
    %30 = vector.multi_reduction <add>, %29, %cst_21 [2] : vector<2x24x16xf32> to vector<2x24xf32>
    %c0_22 = arith.constant 0 : index
    %c0_23 = arith.constant 0 : index
    %31 = vector.load %arg9[%c0_22, %c0_23] : memref<1x1xf32, #tpu.memory_space<vmem>>, vector<1x1xf32>
    %32 = vector.broadcast %31 : vector<1x1xf32> to vector<2x24xf32>
    %33 = arith.addf %30, %32 : vector<2x24xf32>
    %c0_24 = arith.constant 0 : index
    %c0_25 = arith.constant 0 : index
    %c0_26 = arith.constant 0 : index
    %34 = vector.load %arg3[%c0_24, %c0_25, %c0_26] : memref<2x1x24xf32, #tpu.memory_space<vmem>>, vector<2x1x24xf32>
    %35 = vector.shape_cast %34 : vector<2x1x24xf32> to vector<2x24xf32>
    %cst_27 = arith.constant 0.000000e+00 : f32
    %36 = vector.broadcast %cst_27 : f32 to vector<2x24xf32>
    %37 = arith.cmpf oeq, %35, %36 : vector<2x24xf32>
    %cst_28 = arith.constant -1.000000e+09 : f32
    %38 = vector.broadcast %cst_28 : f32 to vector<2x24xf32>
    %39 = arith.select %37, %38, %33 : vector<2x24xi1>, vector<2x24xf32>
    %cst_29 = arith.constant dense<0xFF800000> : vector<2xf32>
    %40 = vector.multi_reduction <maximumf>, %39, %cst_29 [1] : vector<2x24xf32> to vector<2xf32>
    %41 = vector.shape_cast %40 : vector<2xf32> to vector<2x1xf32>
    %42 = vector.broadcast %41 : vector<2x1xf32> to vector<2x24xf32>
    %43 = arith.subf %39, %42 : vector<2x24xf32>
    %44 = math.exp %43 : vector<2x24xf32>
    %cst_30 = arith.constant dense<0.000000e+00> : vector<2xf32>
    %45 = vector.multi_reduction <add>, %44, %cst_30 [1] : vector<2x24xf32> to vector<2xf32>
    %46 = vector.shape_cast %45 : vector<2xf32> to vector<2x1xf32>
    %47 = vector.broadcast %46 : vector<2x1xf32> to vector<2x24xf32>
    %48 = arith.divf %44, %47 : vector<2x24xf32>
    %49 = vector.shape_cast %48 : vector<2x24xf32> to vector<2x1x24xf32>
    %50 = arith.truncf %49 : vector<2x1x24xf32> to vector<2x1x24xbf16>
    %51 = arith.truncf %14 : vector<2x24x32xf32> to vector<2x24x32xbf16>
    "tpu.trace_start"() <{level = 10 : i32, message = "bql,bld->bqd"}> : () -> ()
    %cst_31 = arith.constant dense<0.000000e+00> : vector<2x1x32xf32>
    %52 = tpu.matmul %50, %51, %cst_31 {dimension_numbers = #tpu.dot_dimension_numbers<[2], [1], [1], [2], [0, 0, 0, 1, 1, 2], [0], [0]>} : vector<2x1x24xbf16>, vector<2x24x32xbf16>, vector<2x1x32xf32> -> vector<2x1x32xf32>
    "tpu.trace_stop"() : () -> ()
    %c0_32 = arith.constant 0 : index
    %c0_33 = arith.constant 0 : index
    %c0_34 = arith.constant 0 : index
    %53 = vector.load %arg11[%c0_32, %c0_33, %c0_34] : memref<2x1x32xf32, #tpu.memory_space<vmem>>, vector<2x1x32xf32>
    tpu.vector_store %arg11[%c0_32, %c0_33, %c0_34], %52 {strides = array<i32>} : memref<2x1x32xf32, #tpu.memory_space<vmem>>, vector<2x1x32xf32>,
    return
  }
  func.func @transform_0(%arg0: i32) -> (i32, i32, i32) {
    %c0_i32 = arith.constant 0 : i32
    %c0_i32_0 = arith.constant 0 : i32
    %c0_i32_1 = arith.constant 0 : i32
    return %arg0, %c0_i32, %c0_i32_0 : i32, i32, i32
  }
  func.func @transform_1(%arg0: i32) -> (i32, i32, i32) {
    %c0_i32 = arith.constant 0 : i32
    %c0_i32_0 = arith.constant 0 : i32
    %c0_i32_1 = arith.constant 0 : i32
    return %arg0, %c0_i32, %c0_i32_0 : i32, i32, i32
  }
  func.func @transform_2(%arg0: i32) -> (i32, i32, i32) {
    %c0_i32 = arith.constant 0 : i32
    %c0_i32_0 = arith.constant 0 : i32
    %c0_i32_1 = arith.constant 0 : i32
    return %arg0, %c0_i32, %c0_i32_0 : i32, i32, i32
  }
  func.func @transform_3(%arg0: i32) -> (i32, i32) {
    %c0_i32 = arith.constant 0 : i32
    %c0_i32_0 = arith.constant 0 : i32
    %c0_i32_1 = arith.constant 0 : i32
    return %c0_i32, %c0_i32_0 : i32, i32
  }
  func.func @transform_4(%arg0: i32) -> (i32, i32) {
    %c0_i32 = arith.constant 0 : i32
    %c0_i32_0 = arith.constant 0 : i32
    %c0_i32_1 = arith.constant 0 : i32
    return %c0_i32, %c0_i32_0 : i32, i32
  }
  func.func @transform_5(%arg0: i32) -> (i32, i32) {
    %c0_i32 = arith.constant 0 : i32
    %c0_i32_0 = arith.constant 0 : i32
    %c0_i32_1 = arith.constant 0 : i32
    return %c0_i32, %c0_i32_0 : i32, i32
  }
  func.func @transform_6(%arg0: i32) -> (i32, i32) {
    %c0_i32 = arith.constant 0 : i32
    %c0_i32_0 = arith.constant 0 : i32
    %c0_i32_1 = arith.constant 0 : i32
    return %c0_i32, %c0_i32_0 : i32, i32
  }
  func.func @transform_7(%arg0: i32) -> (i32, i32) {
    %c0_i32 = arith.constant 0 : i32
    %c0_i32_0 = arith.constant 0 : i32
    %c0_i32_1 = arith.constant 0 : i32
    return %c0_i32, %c0_i32_0 : i32, i32
  }
  func.func @transform_8(%arg0: i32) -> (i32, i32) {
    %c0_i32 = arith.constant 0 : i32
    %c0_i32_0 = arith.constant 0 : i32
    %c0_i32_1 = arith.constant 0 : i32
    return %c0_i32, %c0_i32_0 : i32, i32
  }
  func.func @transform_9(%arg0: i32) -> (i32, i32, i32) {
    %c0_i32 = arith.constant 0 : i32
    %c0_i32_0 = arith.constant 0 : i32
    %c0_i32_1 = arith.constant 0 : i32
    return %arg0, %c0_i32, %c0_i32_0 : i32, i32, i32
  }
  func.func @transform_10(%arg0: i32) -> (i32, i32, i32) {
    %c0_i32 = arith.constant 0 : i32
    %c0_i32_0 = arith.constant 0 : i32
    %c0_i32_1 = arith.constant 0 : i32
    return %arg0, %c0_i32, %c0_i32_0 : i32, i32, i32
  }
}

</mosaic_0001>

<bundles_post_ra>
// kernel: _fuse_core.1
= control target key start
LH: loop header
LB: loop body
LE: loop exit
PB: predicated region body
PF: predicated region fallthrough
CT: control target
= control target key end

     0   :  { %s2242_s0 = inlined_call_operand.vmem [shape: f32[4,8,32], index: 0, kind: input, shape index: {}]   ;;  %s2243_s1 = inlined_call_operand.vmem [shape: f32[4,16,32], index: 1, kind: input, shape index: {}]   ;;  %s2244_s2 = inlined_call_operand.vmem [shape: f32[4,1,24], index: 2, kind: input, shape index: {}]   ;;  %s2245_s3 = inlined_call_operand.vmem [shape: f32[32,32], index: 3, kind: input, shape index: {}]   ;;  %s2246_s4 = inlined_call_operand.vmem [shape: f32[1,32], index: 4, kind: input, shape index: {}]   ;;  %s2247_s5 = inlined_call_operand.vmem [shape: f32[32,16], index: 5, kind: input, shape index: {}]   ;;  %s2248_s6 = inlined_call_operand.vmem [shape: f32[1,16], index: 6, kind: input, shape index: {}]   ;;  %s2249_s7 = inlined_call_operand.vmem [shape: f32[1,16], index: 7, kind: input, shape index: {}]   ;;  %s2250_s8 = inlined_call_operand.<no memory space> [shape: f32[1,1], index: 8, kind: input, shape index: {}]   ;;  %s2251_s9 = inlined_call_operand.hbm [shape: f32[4,8,32], index: 9, kind: output, shape index: {0}]   ;;  %s2252_s10 = inlined_call_operand.hbm [shape: f32[4,1,32], index: 10, kind: output, shape index: {1}]  }
   0x1   :  { %v16_v0 = vstv %s2250_s8 }
   0x2   :  { %17 = vst [vmem:[#allocation2] sm:$0x1] %v16_v0 }
   0x3   :  { %18 = vsyncpa [#allocation4], 0 }
   0x4   :  { %20 = vsyncpa [#allocation4 + $0x1], 0 }
   0x5   :  { %21 = vsyncpa [#allocation6], 0 }
   0x6   :  { %23 = vsyncpa [#allocation6 + $0x1], 0  ;;  %s1841_s15 = smov 0   ;;  %s1843_s16 = smov 0  }
   0x7   :  { %s1845_s17 = smov 0   ;;  %s1847_s18 = smov 0  }
   0x8 LB: > { %s1862_s8 = sadd.s32 4294967295, %s1771_s18   ;;  %s1532_s19 = sadd.s32 4294967294, %s1771_s18   ;;  %s1771_s18 = sphi %s1847_s18, %s2259_s18   ;;  %s1767_s17 = sphi %s1845_s17, %s2258_s17   ;;  %s1763_s16 = sphi %s1843_s16, %s2257_s16   ;;  %s1759_s15 = sphi %s1841_s15, %s2256_s15  }
   0x9   : > { %s1866_s20 = sadd.s32 1, %s1771_s18   ;;  %s240_s21 = sadd.s32 1, %s1767_s17 }
   0xa   : > { %s237_s22 = ssub.s32 %s1771_s18, %s1866_s20  ;;  %p250_p0 = scmp.ne.s32.totalorder %s1767_s17, %s1763_s16 }
   0xb   : > { %p238_p1 = scmp.eq.s32.totalorder %s237_s22, 0  ;;  %p251_p2 = scmp.eq.s32.totalorder %s1862_s8, 1 }
   0xc   : > { %p256_p3 = scmp.ne.s32.totalorder %s1763_s16, %s1759_s15  ;;  %p257_p4 = scmp.eq.s32.totalorder %s1532_s19, 1 }
   0xd   : > { %s1877_s23 = scalar_select %p238_p1, %s1767_s17, %s240_s21  }
   0xe   : > { %p1879_p5 = por %p251_p2, %p250_p0  ;;  %p1883_p6 = por %p257_p4, %p256_p3 }
   0xf   : > { %p1535_p7 = scmp.ge.s32.totalorder %s1771_s18, 1  ;;  %p346_p8 = scmp.lt.s32.totalorder %s1771_s18, 3 }
  0x11   : > { %p347_p9 = pnand %p1535_p7, %p346_p8 }
  0x12   : > { %s1538_s12 = sshll.u32 (!%p347_p9), %s1862_s8, 1  ;;  %s1942_s28 = sand.u32 (!%p347_p9), 1, %s1763_s16  }
  0x13   : > { %350 = sbr.rel (%p347_p9) target bundleno = 1308 (0x51c), region = 56  ;;  %p400_p10 = scmp.lt.s32.totalorder (!%p347_p9), %s1538_s12, 3 }
  0x14   : > { %s1536_s13 = sshll.u32 (!%p347_p9), %s1942_s28, 4  ;;  %s1563_s11 = sshll.u32 (!%p347_p9), %s1862_s8, 8 }
  0x15   : > { %s1949_s14 = scalar_lea.vmem (!%p347_p9), [#allocation3], %s1536_s13  ;;  %s2168_s21 = scalar_lea.hbm (!%p347_p9), %s2251_s9, %s1563_s11 }
  0x18   : > { %v425_v1 = vld [vmem:[%s2245_s3 + $0x10] sm:$0xff]  ;;  %v426_v2 = vld [vmem:[%s2245_s3 + $0x18] sm:$0xff]  ;;  %v423_v3 = vld [vmem:[%s2245_s3] sm:$0xff]  ;;  %v1773_v4 = vmov 0.0   ;;  %vm1774_vm0 = vmmov 0   ;;  %s2261_s12 = smov (!%p400_p10, %s1538_s12), 3 }
  0x19   : > { %1579 = vmatprep.subr.bf16.mxu0 %v1773_v4  ;;  %v428_v5 = vpack.c.bf16 %v426_v2, %v425_v1  ;;  %v424_v6 = vld [vmem:[%s2245_s3 + $0x8] sm:$0xff]  ;;  %1583 = vmatprep.mubr.msk.bf16.mxu0 %vm1774_vm0, %v1773_v4  ;;  %s1539_s19 = sshll.u32 %s2261_s12, 3  ;;  %vm436_vm1 = vcmask 261120   ;;  %s1562_s27 = sshll.u32 %s2261_s12, 4  ;;  %v494_v11 = vld [vmem:[%s2247_s5 + $0x10] sm:$0xff]  ;;  %v495_v12 = vld [vmem:[%s2247_s5 + $0x18] sm:$0xff] }
  0x1a   : > { %1587 = vmatprep.subr.bf16.mxu1 %v1773_v4  ;;  %1591 = vmatprep.mubr.msk.bf16.mxu1 %vm1774_vm0, %v1773_v4  ;;  %v427_v7 = vpack.c.bf16 %v424_v6, %v423_v3  ;;  %s403_s26 = scalar_lea.vmem %s2242_s0, %s1539_s19  ;;  %s1923_s30 = scalar_lea.vmem %s2243_s1, %s1562_s27  ;;  %v497_v13 = vpack.c.bf16 %v495_v12, %v494_v11  ;;  %vm1289_vm2 = vcmask 1043456   ;;  %v492_v16 = vld [vmem:[%s2247_s5] sm:$0xff]  ;;  %v493_v17 = vld [vmem:[%s2247_s5 + $0x8] sm:$0xff]  ;;  %v1775_v35 = vmov 0  }
  0x1b   : > { %1580 = vmatpush3.bf16.msra.mxu0 %v428_v5  ;;  %v420_v8 = vld [vmem:[%s403_s26] sm:$0xff]  ;;  %v421_v9 = vld [vmem:[%s403_s26 + $0x8] sm:$0xff]  ;;  %v496_v19 = vpack.c.bf16 %v493_v17, %v492_v16  ;;  %v1967_v32 = vld [vmem:[%s1923_s30 + $0x18] sm:$0xff]  ;;  %1671 = vset.pattern.permute.xlu0 %v1775_v35  ;;  %vm590_vm3 = vcmask 130048   ;;  %vm1150_vm4 = vcmask 130112   ;;  %vm1157_vm5 = vcmask 195712   ;;  %s415_s29 = scalar_lea.vmem %s2244_s2, %s2261_s12 }
  0x1c   : > { %1581 = vmatprep.subr.bf16.mxu0 %v1773_v4  ;;  %v422_v10 = vpack.c.bf16 %v421_v9, %v420_v8  ;;  %v486_v14 = vld [vmem:[%s1923_s30 + $0x8] sm:$0xff]  ;;  %1588 = vmatpush3.bf16.msra.mxu1 %v497_v13  ;;  %v1544_v20 = vld [vmem:[%s2246_s4] ss:$0 sm:$0xff]  ;;  %v1970_v33 = vld [vmem:[%s1923_s30 + $0x10] sm:$0xff]  ;;  %vm1223_vm8 = vcmask 189440   ;;  %vm1285_vm9 = vcmask 195584  }
  0x1d   : > { %v1282_v15 = vpack.c.bf16 %v486_v14, %v486_v14  ;;  %1589 = vmatprep.subr.bf16.mxu1 %v1773_v4  ;;  %v485_v23 = vld [vmem:[%s1923_s30] sm:$0xff]  ;;  %v491_v34 = vpack.c.bf16 %v1967_v32, %v1970_v33  ;;  %1672 = vset.pattern.permute.xlu1 %v1775_v35  ;;  %s1401_s12 = sshll.u32 %s1949_s14, 4  ;;  %s1777_s30 = smov [#allocation3]   ;;  %s2162_s12 = int_to_ptr.vmem [resolvable:$true] %s1401_s12 }
  0x1e   : > { %v1546_v36 = vld [vmem:[%s2248_s6] ss:$0 sm:$0xff]  ;;  %s1681_s26 = scalar_lea.vmem %s2162_s12, 256  ;;  %s1685_s27 = sshll.u32 %s1777_s30, 4  ;;  %s1686_s27 = int_to_ptr.vmem [resolvable:$false] %s1685_s27 }
  0x1f   : > { %1582 = vmatpush3.bf16.msra.mxu0 %v427_v7  ;;  %v1291_v18 = vsel %vm1289_vm2, %v1282_v15, 0  ;;  %v1550_v40 = vld [vmem:[%s2249_s7] ss:$0 sm:$0xff]  ;;  %v1776_v15 = vmov 1966171168   ;;  %p1682_p11 = scmp.ne.s32.totalorder %s2162_s12, %s1681_s26  ;;  %p1688_p0 = scmp.lt.s32.totalorder %s2162_s12, %s1686_s27 }
  0x20   : > { %1603 = vmatprep.subr.bf16.mxu0 %v1773_v4  ;;  %1590 = vmatpush3.bf16.msra.mxu1 %v496_v19  ;;  %v1551_v11 = vld [vmem:[#allocation2] ss:$0 sm:$0xff]  ;;  %v832_v16 = vunpack.c.l.s4 %v1776_v15 }
  0x21   : > { %p1683_p12 = pnand %p1682_p11, %p1879_p5 }
  0x22   : > { %1584 = vmatmul.mubr.msk.bf16.vlgmr.msra.gmra.mxu0 %vm436_vm1, %v422_v10 }
  0x23   : > { %1607 = vmatprep.mubr.msk.bf16.mxu0 %vm1774_vm0, %v1773_v4  ;;  %1604 = vmatpush3.bf16.msra.mxu0 %v1291_v18  ;;  %p1684_p13 = pneg %p1683_p12 }
  0x24   : > { %1605 = vmatprep.subr.bf16.mxu0 %v1773_v4 }
  0xe2   : > { %v474_v21 = vpop.f32.mrf.mxu0 }
  0xe3   : > { %v475_v22 = vadd.f32 %v1544_v20, %v474_v21 }
  0xe4   : > { %v1585_v24 = vpop.f32.mrf.mxu0 }
  0xe5   : > { %v481_v25 = vmax.f32 %v475_v22, 0.0 }
  0xe6   : > { %v477_v26 = vpop.f32.mrf.mxu0 }
  0xe7   : > { %483 = vst.msk [vmem:[%s1949_s14] sm:$0xff] %vm436_vm1, %v481_v25  ;;  %v489_v27 = vpack.c.bf16 %v485_v23, %v481_v25  ;;  %v478_v28 = vadd.f32 %v1544_v20, %v477_v26  ;;  %v833_v20 = vunpack.c.0.s8 %v832_v16 }
  0xe8   : > { %v1586_v29 = vpop.f32.mrf.mxu0 }
  0xe9   : > { %v1953_v30 = vmax.f32 %v478_v28, 0.0  ;;  %1592 = vmatmul.mubr.msk.bf16.vlgmr.msra.gmra.mxu1 %vm436_vm1, %v489_v27  ;;  %1606 = vmatpush3.bf16.msra.mxu0 %v489_v27 }
  0xea   : > { %1595 = vmatprep.mubr.msk.bf16.mxu1 %vm1774_vm0, %v1773_v4  ;;  %1611 = vmatprep.subr.bf16.mxu0 %v1773_v4 }
  0xeb   : > { %484 = vst.msk [vmem:[%s1949_s14 + $0x8] sm:$0xff] %vm436_vm1, %v1953_v30  ;;  %v490_v31 = vpack.c.bf16 %v1953_v30, %v486_v14  ;;  %v635_v14 = vlaneseq  ;;  %s1687_s14 = scalar_lea.vmem %s1686_s27, 512 }
  0xec   : > { %p1689_p1 = scmp.lt.s32.totalorder %s1687_s14, %s1681_s26 }
  0xed   : > { %v1988_v17 = vshrl.u32 %v635_v14, 7 }
  0xee   : > { %p1690_p2 = por %p1689_p1, %p1688_p0 }
  0xef   : > { %v1991_v21 = vsub.s32 0, %v1988_v17  ;;  %v1994_v22 = vsub.s32 1, %v1988_v17  ;;  %v1997_v23 = vsub.s32 2, %v1988_v17  ;;  %v2000_v24 = vsub.s32 3, %v1988_v17 }
  0xf0   : > { %v2003_v27 = vsub.s32 4, %v1988_v17  ;;  %v2006_v28 = vsub.s32 5, %v1988_v17  ;;  %v2009_v29 = vsub.s32 6, %v1988_v17  ;;  %p1691_p3 = pnand %p1690_p2, %p1684_p13 }
  0xf1   : > { %1596 = vmatmul.mubr.msk.bf16.gmra.mxu1 %vm436_vm1, %v490_v31  ;;  %v2012_v31 = vsub.s32 7, %v1988_v17 }
  0xf2   : > { %1599 = vmatprep.mubr.msk.bf16.mxu1 %vm1774_vm0, %v1773_v4 }
  0xf9   : > { %1600 = vmatmul.mubr.msk.bf16.gmra.mxu1 %vm436_vm1, %v491_v34 }
 0x1a9   : > { %v548_v37 = vpop.f32.mrf.mxu1 }
 0x1aa   : > { %v549_v38 = vadd.f32 %v1546_v36, %v548_v37 }
 0x1ab   : > { %v1593_v39 = vpop.f32.mrf.mxu1 }
 0x1ac   : > { %v571_v41 = vmax.f32 %v549_v38, 0.0  ;;  %v2019_v39 = vsub.s32 %v833_v20, %v1988_v17 }
 0x1ad   : > { %v551_v42 = vpop.f32.mrf.mxu1 }
 0x1ae   : > { %v552_v43 = vadd.f32 %v1546_v36, %v551_v42  ;;  %v584_v44 = vmul.f32 %v1550_v40, %v571_v41 }
 0x1af   : > { %v1594_v45 = vpop.f32.mrf.mxu1 }
 0x1b0   : > { %v572_v46 = vmax.f32 %v552_v43, 0.0  ;;  %v591_v47 = vsel %vm590_vm3, %v584_v44, 0.0 }
 0x1b1   : > { %592 = vadd.xlane.f32.xlu0 %v591_v47  ;;  %v556_v48 = vpop.f32.mrf.mxu1 }
 0x1b2   : > { %v557_v49 = vadd.f32 %v1546_v36, %v556_v48  ;;  %v585_v50 = vmul.f32 %v1550_v40, %v572_v46 }
 0x1b3   : > { %v1597_v51 = vpop.f32.mrf.mxu1 }
 0x1b4   : > { %v573_v52 = vmax.f32 %v557_v49, 0.0  ;;  %v594_v53 = vsel %vm590_vm3, %v585_v50, 0.0 }
 0x1b5   : > { %595 = vadd.xlane.f32.xlu0 %v594_v53  ;;  %v559_v54 = vpop.f32.mrf.mxu1 }
 0x1b6   : > { %v560_v55 = vadd.f32 %v1546_v36, %v559_v54  ;;  %v586_v56 = vmul.f32 %v1550_v40, %v573_v52 }
 0x1b7   : > { %v1598_v57 = vpop.f32.mrf.mxu1 }
 0x1b8   : > { %v574_v58 = vmax.f32 %v560_v55, 0.0  ;;  %v597_v59 = vsel %vm590_vm3, %v586_v56, 0.0 }
 0x1b9   : > { %598 = vadd.xlane.f32.xlu0 %v597_v59  ;;  %v564_v60 = vpop.f32.mrf.mxu1 }
 0x1ba   : > { %v565_v61 = vadd.f32 %v1546_v36, %v564_v60  ;;  %v587_v62 = vmul.f32 %v1550_v40, %v574_v58 }
 0x1bb   : > { %v1601_v63 = vpop.f32.mrf.mxu1 }
 0x1bc   : > { %v575_v0 = vmax.f32 %v565_v61, 0.0  ;;  %v600_v1 = vsel %vm590_vm3, %v587_v62, 0.0 }
 0x1bd   : > { %601 = vadd.xlane.f32.xlu1 %v600_v1  ;;  %v567_v2 = vpop.f32.mrf.mxu1 }
 0x1be   : > { %v568_v3 = vadd.f32 %v1546_v36, %v567_v2  ;;  %v588_v5 = vmul.f32 %v1550_v40, %v575_v0 }
 0x1bf   : > { %v1602_v6 = vpop.f32.mrf.mxu1 }
 0x1c0   : > { %v576_v7 = vmax.f32 %v568_v3, 0.0  ;;  %v603_v8 = vsel %vm590_vm3, %v588_v5, 0.0 }
 0x1c1   : > { %604 = vadd.xlane.f32.xlu1 %v603_v8 }
 0x1c2   : > { %v589_v9 = vmul.f32 %v1550_v40, %v576_v7 }
 0x1c4   : > { %v606_v10 = vsel %vm590_vm3, %v589_v9, 0.0 }
 0x1c5   : > { %607 = vadd.xlane.f32.xlu1 %v606_v10 }
 0x1cf   : > { %616 = vperm.xlu0 %1671, %v1551_v11  }
 0x23a   : > { %v593_v12 = vpop.xlane.xlu0 %592 }
 0x23e   : > { %v596_v13 = vpop.xlane.xlu0 %595 }
 0x242   : > { %v599_v18 = vpop.xlane.xlu0 %598 }
 0x246   : > { %v602_v19 = vpop.xlane.xlu1 %601 }
 0x24a   : > { %v617_v25 = vpop.permute.xlu0 %616  ;;  %v605_v26 = vpop.xlane.xlu1 %604 }
 0x24b   : > { %v619_v34 = vadd.f32 %v617_v25, %v593_v12  ;;  %v620_v35 = vadd.f32 %v617_v25, %v596_v13  ;;  %v621_v36 = vadd.f32 %v617_v25, %v599_v18  ;;  %v2014_v37 = vadd.f32 %v617_v25, %v602_v19 }
 0x24c   : > { %v2016_v38 = vadd.f32 %v617_v25, %v605_v26 }
 0x24d   : > { %v638_v40 = vrot.slane %v619_v34, %v1991_v21  ;;  %v642_v41 = vrot.slane %v619_v34, %v1994_v22  ;;  %v646_v42 = vrot.slane %v619_v34, %v1997_v23  ;;  %v650_v43 = vrot.slane %v619_v34, %v2000_v24 }
 0x24e   : > { %v608_v44 = vpop.xlane.xlu1 %607  ;;  %v654_v45 = vrot.slane %v619_v34, %v2003_v27  ;;  %v658_v46 = vrot.slane %v619_v34, %v2006_v28  ;;  %v662_v47 = vrot.slane %v619_v34, %v2009_v29  ;;  %v666_v48 = vrot.slane %v619_v34, %v2012_v31 }
 0x24f   : > { %v2029_v49 = vadd.f32 %v617_v25, %v608_v44  ;;  %v827_v50 = vcombine.low %v638_v40, %v642_v41  ;;  %v828_v51 = vcombine.low %v646_v42, %v650_v43  ;;  %v670_v52 = vrot.slane %v620_v35, %v1991_v21 }
 0x250   : > { %v829_v53 = vcombine.low %v654_v45, %v658_v46  ;;  %v830_v54 = vcombine.low %v662_v47, %v666_v48  ;;  %v674_v55 = vrot.slane %v620_v35, %v1994_v22  ;;  %v678_v56 = vrot.slane %v620_v35, %v1997_v23 }
 0x251   : > { %v837_v57 = vrot.slane %v827_v50, %v2019_v39  ;;  %v844_v58 = vrot.slane %v828_v51, %v2019_v39  ;;  %v682_v59 = vrot.slane %v620_v35, %v2000_v24  ;;  %v686_v60 = vrot.slane %v620_v35, %v2003_v27 }
 0x252   : > { %v851_v61 = vrot.slane %v829_v53, %v2019_v39  ;;  %v858_v62 = vrot.slane %v830_v54, %v2019_v39  ;;  %v690_v63 = vrot.slane %v620_v35, %v2006_v28  ;;  %v694_v0 = vrot.slane %v620_v35, %v2009_v29 }
 0x253   : > { %v859_v1 = vcombine.low %v837_v57, %v844_v58  ;;  %v698_v2 = vrot.slane %v620_v35, %v2012_v31  ;;  %v876_v3 = vcombine.low %v670_v52, %v674_v55  ;;  %v877_v5 = vcombine.low %v678_v56, %v682_v59 }
 0x254   : > { %v860_v6 = vcombine.low %v851_v61, %v858_v62  ;;  %v878_v7 = vcombine.low %v686_v60, %v690_v63  ;;  %v702_v8 = vrot.slane %v621_v36, %v1991_v21  ;;  %v706_v9 = vrot.slane %v621_v36, %v1994_v22 }
 0x255   : > { %v867_v10 = vrot.slane %v859_v1, %v2019_v39  ;;  %v879_v11 = vcombine.low %v694_v0, %v698_v2  ;;  %v886_v12 = vrot.slane %v876_v3, %v2019_v39  ;;  %v893_v13 = vrot.slane %v877_v5, %v2019_v39 }
 0x256   : > { %v874_v15 = vrot.slane %v860_v6, %v2019_v39  ;;  %v900_v16 = vrot.slane %v878_v7, %v2019_v39  ;;  %v710_v18 = vrot.slane %v621_v36, %v1997_v23  ;;  %v714_v19 = vrot.slane %v621_v36, %v2000_v24 }
 0x257   : > { %v907_v20 = vrot.slane %v879_v11, %v2019_v39  ;;  %v908_v25 = vcombine.low %v886_v12, %v893_v13  ;;  %v718_v26 = vrot.slane %v621_v36, %v2003_v27  ;;  %v722_v34 = vrot.slane %v621_v36, %v2006_v28 }
 0x258   : > { %v875_v35 = vcombine.low %v867_v10, %v874_v15  ;;  %v726_v40 = vrot.slane %v621_v36, %v2009_v29  ;;  %v730_v41 = vrot.slane %v621_v36, %v2012_v31  ;;  %v925_v42 = vcombine.low %v702_v8, %v706_v9 }
 0x259   : > { %v909_v43 = vcombine.low %v900_v16, %v907_v20  ;;  %v916_v44 = vrot.slane %v908_v25, %v2019_v39  ;;  %v926_v45 = vcombine.low %v710_v18, %v714_v19  ;;  %v927_v46 = vcombine.low %v718_v26, %v722_v34 }
 0x25a   : > { %1122 = vperm.xlu1 %1672, %v875_v35   ;;  %v928_v47 = vcombine.low %v726_v40, %v730_v41  ;;  %v935_v48 = vrot.slane %v925_v42, %v2019_v39  ;;  %v734_v50 = vrot.slane %v2014_v37, %v1991_v21  ;;  %v738_v51 = vrot.slane %v2014_v37, %v1994_v22 }
 0x25b   : > { %v923_v52 = vrot.slane %v909_v43, %v2019_v39  ;;  %v942_v36 = vrot.slane %v926_v45, %v2019_v39  ;;  %v949_v53 = vrot.slane %v927_v46, %v2019_v39  ;;  %v742_v54 = vrot.slane %v2014_v37, %v1997_v23 }
 0x25c   : > { %v956_v55 = vrot.slane %v928_v47, %v2019_v39  ;;  %v746_v56 = vrot.slane %v2014_v37, %v2000_v24  ;;  %v750_v57 = vrot.slane %v2014_v37, %v2003_v27  ;;  %v754_v58 = vrot.slane %v2014_v37, %v2006_v28 }
 0x25d   : > { %v924_v59 = vcombine.low %v916_v44, %v923_v52  ;;  %v957_v60 = vcombine.low %v935_v48, %v942_v36  ;;  %v758_v61 = vrot.slane %v2014_v37, %v2009_v29  ;;  %v762_v62 = vrot.slane %v2014_v37, %v2012_v31 }
 0x25e   : > { %v958_v63 = vcombine.low %v949_v53, %v956_v55  ;;  %v974_v0 = vcombine.low %v734_v50, %v738_v51  ;;  %v975_v1 = vcombine.low %v742_v54, %v746_v56  ;;  %v976_v2 = vcombine.low %v750_v57, %v754_v58 }
 0x25f   : > { %1125 = vperm.xlu1 %1672, %v924_v59   ;;  %v965_v3 = vrot.slane %v957_v60, %v2019_v39  ;;  %v977_v5 = vcombine.low %v758_v61, %v762_v62  ;;  %v766_v6 = vrot.slane %v2016_v38, %v1991_v21  ;;  %v770_v7 = vrot.slane %v2016_v38, %v1994_v22 }
 0x260   : > { %v972_v8 = vrot.slane %v958_v63, %v2019_v39  ;;  %v984_v9 = vrot.slane %v974_v0, %v2019_v39  ;;  %v991_v37 = vrot.slane %v975_v1, %v2019_v39  ;;  %v998_v10 = vrot.slane %v976_v2, %v2019_v39 }
 0x261   : > { %v1005_v11 = vrot.slane %v977_v5, %v2019_v39  ;;  %v774_v12 = vrot.slane %v2016_v38, %v1997_v23  ;;  %v778_v13 = vrot.slane %v2016_v38, %v2000_v24  ;;  %v782_v15 = vrot.slane %v2016_v38, %v2003_v27 }
 0x262   : > { %v973_v16 = vcombine.low %v965_v3, %v972_v8  ;;  %v1006_v18 = vcombine.low %v984_v9, %v991_v37  ;;  %v786_v19 = vrot.slane %v2016_v38, %v2006_v28  ;;  %v790_v20 = vrot.slane %v2016_v38, %v2009_v29 }
 0x263   : > { %v1007_v25 = vcombine.low %v998_v10, %v1005_v11  ;;  %v794_v26 = vrot.slane %v2016_v38, %v2012_v31  ;;  %v1023_v34 = vcombine.low %v766_v6, %v770_v7  ;;  %v1024_v35 = vcombine.low %v774_v12, %v778_v13 }
 0x264   : > { %1128 = vperm.xlu1 %1672, %v973_v16   ;;  %v1014_v40 = vrot.slane %v1006_v18, %v2019_v39  ;;  %v1025_v41 = vcombine.low %v782_v15, %v786_v19  ;;  %v798_v42 = vrot.slane %v2029_v49, %v1991_v21  ;;  %v802_v43 = vrot.slane %v2029_v49, %v1994_v22 }
 0x265   : > { %v1021_v44 = vrot.slane %v1007_v25, %v2019_v39  ;;  %v1026_v45 = vcombine.low %v790_v20, %v794_v26  ;;  %v1033_v46 = vrot.slane %v1023_v34, %v2019_v39  ;;  %v1040_v47 = vrot.slane %v1024_v35, %v2019_v39 }
 0x266   : > { %v1047_v38 = vrot.slane %v1025_v41, %v2019_v39  ;;  %v806_v48 = vrot.slane %v2029_v49, %v1997_v23  ;;  %v810_v50 = vrot.slane %v2029_v49, %v2000_v24  ;;  %v814_v51 = vrot.slane %v2029_v49, %v2003_v27  ;;  %v626_v41 = vld [vmem:[%s415_s29 + $0x1] sm:$0x1] }
 0x267   : > { %v1022_v52 = vcombine.low %v1014_v40, %v1021_v44  ;;  %v1054_v36 = vrot.slane %v1026_v45, %v2019_v39  ;;  %v1055_v53 = vcombine.low %v1033_v46, %v1040_v47  ;;  %v818_v54 = vrot.slane %v2029_v49, %v2006_v28 }
 0x268   : > { %v822_v55 = vrot.slane %v2029_v49, %v2009_v29  ;;  %v826_v56 = vrot.slane %v2029_v49, %v2012_v31  ;;  %v1072_v23 = vcombine.low %v798_v42, %v802_v43  ;;  %v1073_v57 = vcombine.low %v806_v48, %v810_v50 }
 0x269   : > { %1131 = vperm.xlu1 %1672, %v1022_v52   ;;  %v1056_v24 = vcombine.low %v1047_v38, %v1054_v36  ;;  %v1063_v58 = vrot.slane %v1055_v53, %v2019_v39  ;;  %v1074_v27 = vcombine.low %v814_v51, %v818_v54  ;;  %v1140_v6 = vand.u32 127, %v635_v14 }
 0x26a   : > { %v1075_v59 = vcombine.low %v822_v55, %v826_v56  ;;  %v1082_v60 = vrot.slane %v1072_v23, %v2019_v39  ;;  %v1089_v61 = vrot.slane %v1073_v57, %v2019_v39  ;;  %vm628_vm7 = vcmp.eq.f32.partialorder %v626_v41, 0.0 }
 0x26b   : > { %v1070_v28 = vrot.slane %v1056_v24, %v2019_v39  ;;  %v1096_v62 = vrot.slane %v1074_v27, %v2019_v39  ;;  %v1145_v7 = vadd.s32 4294967288, %v1140_v6  ;;  %v1152_v9 = vadd.s32 4294967280, %v1140_v6 }
 0x26c   : > { %v1103_v29 = vrot.slane %v1075_v59, %v2019_v39  ;;  %v1104_v63 = vcombine.low %v1082_v60, %v1089_v61  ;;  %v1143_v12 = vsub.s32 %v1140_v6, %v1988_v17 }
 0x26d   : > { %v1071_v31 = vcombine.low %v1063_v58, %v1070_v28  ;;  %v1148_v37 = vsub.s32 %v1145_v7, %v1988_v17  ;;  %v1155_v10 = vsub.s32 %v1152_v9, %v1988_v17  ;;  %v625_v17 = vld [vmem:[%s415_s29] sm:$0x1] }
 0x26e   : > { %v1105_v49 = vcombine.low %v1096_v62, %v1103_v29  ;;  %v1112_v0 = vrot.slane %v1104_v63, %v2019_v39  ;;  %vm627_vm6 = vcmp.eq.f32.partialorder %v625_v17, 0.0  ;;  %v1284_v29 = vpack.c.bf16 %v1967_v32, %v1967_v32 }
 0x26f   : > { %1134 = vperm.xlu1 %1672, %v1071_v31   ;;  %v1283_v32 = vpack.c.bf16 %v1970_v33, %v1953_v30 }
 0x270   : > { %v1119_v1 = vrot.slane %v1105_v49, %v2019_v39 }
 0x272   : > { %v1120_v2 = vcombine.low %v1112_v0, %v1119_v1 }
 0x274   : > { %1137 = vperm.xlu1 %1672, %v1120_v2  }
 0x2d5   : > { %v1123_v3 = vpop.permute.xlu1 %1122 }
 0x2d6   : > { %v1144_v16 = vrot.slane %v1123_v3, %v1143_v12 }
 0x2da   : > { %v1126_v5 = vpop.permute.xlu1 %1125 }
 0x2db   : > { %v1149_v13 = vrot.slane %v1126_v5, %v1148_v37 }
 0x2dd   : > { %v1151_v19 = vsel %vm1150_vm4, %v1149_v13, %v1144_v16 }
 0x2df   : > { %v1129_v8 = vpop.permute.xlu1 %1128 }
 0x2e0   : > { %v1156_v15 = vrot.slane %v1129_v8, %v1155_v10 }
 0x2e2   : > { %v1158_v20 = vsel %vm1157_vm5, %v1156_v15, %v1151_v19 }
 0x2e3   : > { %v1179_v25 = vrot.slane %v1158_v20, %v2019_v39 }
 0x2e4   : > { %v1132_v11 = vpop.permute.xlu1 %1131 }
 0x2e5   : > { %v1162_v26 = vrot.slane %v1132_v11, %v1143_v12  ;;  %v1186_v43 = vrot.slane %v1179_v25, %v2019_v39 }
 0x2e7   : > { %v1203_v46 = vsel %vm627_vm6, -1e+09, %v1186_v43 }
 0x2ea   : > { %v1135_v18 = vpop.permute.xlu1 %1134 }
 0x2eb   : > { %v1166_v14 = vrot.slane %v1135_v18, %v1148_v37 }
 0x2ed   : > { %v1167_v40 = vsel %vm1150_vm4, %v1166_v14, %v1162_v26 }
 0x2ef   : > { %v1138_v34 = vpop.permute.xlu1 %1137 }
 0x2f0   : > { %v1171_v35 = vrot.slane %v1138_v34, %v1155_v10 }
 0x2f2   : > { %v1172_v42 = vsel %vm1157_vm5, %v1171_v35, %v1167_v40 }
 0x2f3   : > { %v1193_v44 = vrot.slane %v1172_v42, %v2019_v39 }
 0x2f5   : > { %v1200_v45 = vrot.slane %v1193_v44, %v2019_v39 }
 0x2f7   : > { %v1204_v47 = vsel %vm628_vm7, -1e+09, %v1200_v45 }
 0x2f8   : > { %v1207_v38 = vcombine.low %v1203_v46, %v1204_v47 }
 0x2fa   : > { %v1214_v48 = vrot.slane %v1207_v38, %v2019_v39 }
 0x2fc   : > { %v1221_v50 = vrot.slane %v1214_v48, %v2019_v39 }
 0x2fe   : > { %v1224_v51 = vsel %vm1223_vm8, %v1221_v50, -inf }
 0x2ff   : > { %1225 = vmax.xlane.f32.xlu1 %v1224_v51 }
 0x388   : > { %v1226_v52 = vpop.xlane.xlu1 %1225 }
 0x389   : > { %v1231_v36 = vrot.slane %v1226_v52, %v1991_v21  ;;  %v1235_v53 = vrot.slane %v1226_v52, %v1994_v22 }
 0x38b   : > { %v1238_v54 = vsub.f32 %v1203_v46, %v1231_v36  ;;  %v1239_v55 = vsub.f32 %v1204_v47, %v1235_v53 }
 0x38d   : > { %v1240_v56 = vmul.f32 1.442695, %v1238_v54  ;;  %v1242_v23 = vmul.f32 1.442695, %v1239_v55 }
 0x38f   : > { %1673 = vpow2.f32 %v1240_v56 }
 0x390   : > { %1675 = vpow2.f32 %v1242_v23 }
 0x39c   : > { %v1674_v57 = vpop.eup %1673 }
 0x39d   : > { %v1676_v24 = vpop.eup %1675 }
 0x39e   : > { %v1246_v58 = vcombine.low %v1674_v57, %v1676_v24 }
 0x3a0   : > { %v1253_v27 = vrot.slane %v1246_v58, %v2019_v39 }
 0x3a2   : > { %v1260_v59 = vrot.slane %v1253_v27, %v2019_v39  ;;  %v1337_v39 = vsel %vm1289_vm2, %v1284_v29, 0 }
 0x3a4   : > { %v1262_v60 = vsel %vm1223_vm8, %v1260_v59, 0.0 }
 0x3a5   : > { %1263 = vadd.xlane.f32.xlu0 %v1262_v60 }
 0x42e   : > { %v1264_v61 = vpop.xlane.xlu0 %1263 }
 0x42f   : > { %v1269_v28 = vrot.slane %v1264_v61, %v1991_v21  ;;  %v1273_v62 = vrot.slane %v1264_v61, %v1994_v22 }
 0x431   : > { %1677 = vrcp.f32 %v1269_v28 }
 0x432   : > { %1679 = vrcp.f32 %v1273_v62 }
 0x43e   : > { %v1678_v63 = vpop.eup %1677 }
 0x43f   : > { %v1277_v31 = vmul.f32 %v1678_v63, %v1674_v57  ;;  %v1680_v0 = vpop.eup %1679 }
 0x440   : > { %v1279_v21 = vmul.f32 %v1680_v0, %v1676_v24 }
 0x441   : > { %v1280_v49 = vpack.c.bf16 %v1277_v31, %v1277_v31 }
 0x442   : > { %v1281_v22 = vpack.c.bf16 %v1279_v21, %v1279_v21 }
 0x443   : > { %1608 = vmatmul.mubr.msk.bf16.vlgmr.msra.gmra.mxu0 %vm1285_vm9, %v1280_v49 }
 0x444   : > { %1612 = vmatpush3.bf16.msra.mxu0 %v1337_v39  ;;  %1615 = vmatprep.mubr.msk.bf16.mxu0 %vm1774_vm0, %v1773_v4 }
 0x445   : > { %1613 = vmatprep.subr.bf16.mxu0 %v1773_v4 }
 0x448   : > { %1614 = vmatpush3.bf16.msra.mxu0 %v1283_v32 }
 0x44b   : > { %1616 = vmatmul.mubr.msk.bf16.vlgmr.msra.gmra.mxu0 %vm1285_vm9, %v1281_v22 }
 0x44c   : > { %1694 = shalt.err (!%p1691_p3)
}
 0x44d   : > { %s1695_s29 = scalar_lea.hbm %s2168_s21, 256  ;;  %s1699_s19 = scalar_lea.hbm %s2251_s9, 512 }
 0x44e   : > { %p1696_p4 = scmp.ne.s32.totalorder %s2168_s21, %s1695_s29  ;;  %p1700_p9 = scmp.lt.s32.totalorder %s2168_s21, %s2251_s9 }
 0x44f   : > { %p1701_p10 = scmp.lt.s32.totalorder %s1699_s19, %s1695_s29 }
 0x450   : > { %p1697_p7 = pnand %p1696_p4, %p1879_p5 }
 0x451   : > { %p1702_p11 = por %p1701_p10, %p1700_p9 }
 0x452   : > { %p1698_p8 = pneg %p1697_p7 }
 0x454   : > { %p1703_p12 = pnand %p1702_p11, %p1698_p8 }
 0x456   : > { %1706 = shalt.err (!%p1703_p12)
}
 0x457   : > { %s1778_s26 = smov 128   ;;  %s1779_s27 = smov 8   ;;  %vm1379_vm10 = vcmask 253952  }
 0x458   : > { %s2255_s14 = scalar_lea.sflag [#allocation4], %s1942_s28  ;;  %s1537_s11 = sshll.u32 %s1942_s28, 1 }
 0x459   : > { %1619 = dma.vmem_to_hbm [thread:$0]  (%p1879_p5), %s2162_s12, 256, %s2168_s21, %s2255_s14, %s1778_s26, %s1778_s26, %s1779_s27  }
 0x45a   : > { %s398_s22 = scalar_lea.vmem [#allocation5], %s1537_s11  ;;  %s1564_s13 = sshll.u32 %s1862_s8, 5 }
 0x45b   : > { %s1417_s29 = sshll.u32 %s398_s22, 4  ;;  %s2200_s12 = scalar_lea.hbm %s2252_s10, %s1564_s13  ;;  %s2195_s29 = int_to_ptr.vmem [resolvable:$true] %s1417_s29 }
 0x45c   : > { %s1388_s21 = scalar_lea.sflag [#allocation6], %s1942_s28  ;;  %s1707_s26 = scalar_lea.vmem %s2195_s29, 32 }
 0x45d   : > { %p1708_p13 = scmp.ne.s32.totalorder %s2195_s29, %s1707_s26  ;;  %s1780_s8 = smov [#allocation5]  }
 0x45e   : > { %s1711_s27 = sshll.u32 %s1780_s8, 4  ;;  %s1712_s27 = int_to_ptr.vmem [resolvable:$false] %s1711_s27 }
 0x45f   : > { %p1709_p0 = pnand %p1708_p13, %p1879_p5  ;;  %s1713_s14 = scalar_lea.vmem %s1712_s27, 64 }
 0x460   : > { %p1714_p2 = scmp.lt.s32.totalorder %s2195_s29, %s1712_s27  ;;  %p1715_p3 = scmp.lt.s32.totalorder %s1713_s14, %s1707_s26 }
 0x461   : > { %p1710_p1 = pneg %p1709_p0 }
 0x462   : > { %p1716_p4 = por %p1715_p3, %p1714_p2 }
 0x464   : > { %p1717_p7 = pnand %p1716_p4, %p1710_p1 }
 0x503   : > { %v1327_v4 = vpop.f32.mrf.mxu0 }
 0x504   : > { %1380 = vst.msk [vmem:[%s398_s22] sm:$0x1] %vm1379_vm10, %v1327_v4 }
 0x505   : > { %v1609_v30 = vpop.f32.mrf.mxu0 }
 0x507   : > { %v1330_v33 = vpop.f32.mrf.mxu0 }
 0x509   : > { %v1610_v1 = vpop.f32.mrf.mxu0 }
 0x50b   : > { %v1373_v2 = vpop.f32.mrf.mxu0 }
 0x50c   : > { %1381 = vst.msk [vmem:[%s398_s22 + $0x1] sm:$0x1] %vm1379_vm10, %v1373_v2 }
 0x50d   : > { %v1617_v3 = vpop.f32.mrf.mxu0 }
 0x50e   : > { %1720 = shalt.err (!%p1717_p7)
}
 0x50f   : > { %s1721_s11 = scalar_lea.hbm %s2200_s12, 32  ;;  %s1725_s19 = scalar_lea.hbm %s2252_s10, 64 }
 0x510   : > { %p1722_p8 = scmp.ne.s32.totalorder %s2200_s12, %s1721_s11  ;;  %p1726_p11 = scmp.lt.s32.totalorder %s2200_s12, %s2252_s10 }
 0x511   : > { %p1727_p12 = scmp.lt.s32.totalorder %s1725_s19, %s1721_s11 }
 0x512   : > { %p1723_p9 = pnand %p1722_p8, %p1879_p5 }
 0x513   : > { %p1728_p13 = por %p1727_p12, %p1726_p11 }
 0x514   : > { %p1724_p10 = pneg %p1723_p9 }
 0x516   : > { %p1729_p0 = pnand %p1728_p13, %p1724_p10 }
 0x518   : > { %1732 = shalt.err (!%p1729_p0)
}
 0x519   : > { %s1781_s26 = smov 16   ;;  %s1782_s27 = smov 1   ;;  %v1376_v5 = vpop.f32.mrf.mxu0 }
 0x51a   : > { %1620 = dma.vmem_to_hbm [thread:$0]  (%p1879_p5), %s2195_s29, 32, %s2200_s12, %s1388_s21, %s1781_s26, %s1781_s26, %s1782_s27  }
 0x51b   : > { %v1618_v6 = vpop.f32.mrf.mxu0 }
 0x51c PF: > { %p1630_p1 = scmp.ge.s32.totalorder %s1771_s18, 2  ;;  %s1432_s14 = sand.u32 1, %s1759_s15  }
 0x51d   : > { %s1433_s11 = scalar_lea.sflag [#allocation4], %s1432_s14 }
 0x51e   : > { %p1624_p2 = pnand %p1630_p1, %p1883_p6 }
 0x520   : > { %p1625_p3 = pneg %p1624_p2 }
 0x522   : > { %1750 = dma.done.wait (%p1625_p3), %s1433_s11, 256  }
 0x523   : > { %1752 = vsyncadd (%p1625_p3), %s1433_s11, 4294967040  ;;  %s1442_s22 = scalar_lea.sflag [#allocation6], %s1432_s14 }
 0x524   : > { %1754 = dma.done.wait (%p1625_p3), %s1442_s22, 32  }
 0x525   : > { %1756 = vsyncadd (%p1625_p3), %s1442_s22, 4294967264  ;;  %p26_p5 = scmp.ge.s32.totalorder %s1866_s20, 4   ;;  %s2256_s15 = smov %s1763_s16 }
 0x526   : > { %s2257_s16 = smov %s1767_s17  ;;  %s2258_s17 = smov %s1877_s23 }
 0x527   : > { %s2259_s18 = smov %s1866_s20  ;;  %28 = sbr.rel (!%p26_p5) target bundleno = 8 (0x8), region = 114 }
 0x52c   :  { %1447 = vsyncpa [#allocation4], 1 }
 0x52d   :  { %1449 = vsyncpa [#allocation4 + $0x1], 1 }
 0x52e   :  { %1450 = vsyncpa [#allocation6], 1 }
 0x52f   :  { %1452 = vsyncpa [#allocation6 + $0x1], 1 }

</bundles_post_ra>
